<compile_context>
chip_gen: v7x
topology: tpu7x:2x2x1
jax: 0.10.0
libtpu: 0.0.40
codegen_flags: <defaults>
</compile_context>

<pallas_src>
import functools

import jax
import jax.numpy as jnp
from jax.experimental import pallas as pl
from jax.experimental.pallas import tpu as pltpu


def _round_up(x, m):
    return (x + m - 1) // m * m


def _pick_tile(batch):
    """Batch-tile rows per grid step."""
    if batch <= 16:
        return batch  # single tile equal to the full (tiny) batch dim
    # Keep >= 2 grid steps so v7x's two TensorCores both get work; cap at 512
    # rows (per-step overhead amortized; ~10 MiB VMEM incl. double buffers).
    return min(512, _round_up(pl.cdiv(batch, 2), 16))


def vae_kernel(x_ref, wenc_ref, benc_ref, wdec_ref, bdec_ref, eps_ref,
               recon_ref, enc_ref, *, lp):
    # Cast x to bf16 in-register, per tile (no materialized bf16 copy in HBM).
    x = x_ref[...].astype(jnp.bfloat16)                                 # (TM, D)

    # ---- encode: fused mu|logvar projection -> one lane-dense (TM, 2*LP) matmul ----
    enc = jnp.dot(x, wenc_ref[...],
                  preferred_element_type=jnp.float32) + benc_ref[...]   # (TM, 2*LP) f32
    mu = enc[:, :lp]                                                    # (TM, LP)
    logvar = enc[:, lp:]                                                # (TM, LP)

    # ---- reparameterise: z = mu + eps * exp(0.5 * logvar) (f32; exp -> EUP) ----
    z = mu + eps_ref[...] * jnp.exp(0.5 * logvar)                       # (TM, LP)

    # ---- decode: p(x|z) ----
    recon = jnp.dot(z.astype(wdec_ref.dtype), wdec_ref[...],
                    preferred_element_type=jnp.float32) + bdec_ref[...]  # (TM, D) f32

    recon_ref[...] = recon.astype(recon_ref.dtype)   # bf16 store: halve the biggest write
    enc_ref[...] = enc                               # packed mu|logvar, f32


def pack_params(params, input_size, latent_size):
    """One-time packing/casting of the weights (hoisted out of the forward path)."""
    w_mu, b_mu, w_lv, b_lv, w_dec, b_dec = params
    D, L = input_size, latent_size
    LP = _round_up(max(L, 128), 128)  # lane-dense padded latent width

    # Packed mu|logvar encoder weights, zero-padded, bf16 for the MXU.
    wenc = jnp.zeros((D, 2 * LP), jnp.float32)
    wenc = wenc.at[:, :L].set(w_mu).at[:, LP:LP + L].set(w_lv).astype(jnp.bfloat16)
    benc = jnp.zeros((1, 2 * LP), jnp.float32)
    benc = benc.at[:, :L].set(b_mu.reshape(1, L)).at[:, LP:LP + L].set(b_lv.reshape(1, L))

    # Decoder weights: padded latent rows are zero so padded z lanes never leak.
    wdec = jnp.zeros((LP, D), jnp.float32).at[:L, :].set(w_dec).astype(jnp.bfloat16)
    bdec = b_dec.reshape(1, D).astype(jnp.float32)

    return (wenc, benc, wdec, bdec, LP)


def vae_forward(x_nchw, packed_params, eps, input_size, latent_size):
    """Run the fused VAE forward pass. Returns (recon[bf16], mu, logvar)."""
    wenc, benc, wdec, bdec, LP = packed_params
    D, L = input_size, latent_size

    x2d = x_nchw.reshape(-1, D)          # x.view(-1, input_size); stays in native f32
    B = x2d.shape[0]

    # Padded eps (padded logvar lanes are exactly 0 -> exp(0)=1, eps lanes 0 -> no leak).
    eps_p = jnp.zeros((1, LP), jnp.float32).at[:, :L].set(eps.reshape(1, L))

    TM = _pick_tile(B)
    grid = (pl.cdiv(B, TM),)             # partial last tile handled by masked writes

    batch_spec = lambda shape: pl.BlockSpec(shape, lambda i: (i, 0))
    fixed_spec = lambda shape: pl.BlockSpec(shape, lambda i: (0, 0))

    flops = 2 * B * D * (2 * LP) + 2 * B * LP * D
    bytes_accessed = (
        B * D * 4                         # x read (f32)
        + wenc.size * 2 + wdec.size * 2   # bf16 weights
        + benc.size * 4 + bdec.size * 4 + eps_p.size * 4
        + B * D * 2                       # recon write (bf16)
        + B * 2 * LP * 4)                 # packed enc write (f32)

    recon, enc = pl.pallas_call(
        functools.partial(vae_kernel, lp=LP),
        out_shape=(
            jax.ShapeDtypeStruct((B, D), jnp.bfloat16),     # recon
            jax.ShapeDtypeStruct((B, 2 * LP), jnp.float32),  # packed mu|logvar
        ),
        grid_spec=pltpu.PrefetchScalarGridSpec(
            num_scalar_prefetch=0,
            grid=grid,
            in_specs=[
                batch_spec((TM, D)),        # x         (tiled over batch)
                fixed_spec((D, 2 * LP)),    # w_enc     (VMEM-resident across tiles)
                fixed_spec((1, 2 * LP)),    # b_enc
                fixed_spec((LP, D)),        # w_dec
                fixed_spec((1, D)),         # b_dec
                fixed_spec((1, LP)),        # eps
            ],
            out_specs=[
                batch_spec((TM, D)),        # recon (bf16)
                batch_spec((TM, 2 * LP)),   # enc = mu|logvar (f32)
            ],
        ),
        compiler_params=pltpu.CompilerParams(
            dimension_semantics=("parallel",),
        ),
        cost_estimate=pl.CostEstimate(
            flops=flops,
            transcendentals=B * LP,
            bytes_accessed=bytes_accessed,
        ),
    )(x2d, wenc, benc, wdec, bdec, eps_p)

    mu = enc[:, :L]
    logvar = enc[:, LP:LP + L]
    return recon, mu, logvar


def init_params(key, input_size, latent_size):
    ks = jax.random.split(key, 3)
    scale_enc = 1.0 / jnp.sqrt(jnp.float32(input_size))
    scale_dec = 1.0 / jnp.sqrt(jnp.float32(latent_size))
    w_mu = jax.random.normal(ks[0], (input_size, latent_size), jnp.float32) * scale_enc
    b_mu = jnp.zeros((1, latent_size), jnp.float32)
    w_lv = jax.random.normal(ks[1], (input_size, latent_size), jnp.float32) * scale_enc
    b_lv = jnp.zeros((1, latent_size), jnp.float32)
    w_dec = jax.random.normal(ks[2], (latent_size, input_size), jnp.float32) * scale_dec
    b_dec = jnp.zeros((1, input_size), jnp.float32)
    return (w_mu, b_mu, w_lv, b_lv, w_dec, b_dec)


if __name__ == "__main__":
    key = jax.random.PRNGKey(0)
    k_x, k_params, k_eps = jax.random.split(key, 3)

    B, C, H, W = 2, 4, 16, 16
    input_size = C * H * W          # 1024
    latent_size = 32

    x = jax.random.normal(k_x, (B, C, H, W), jnp.float32)
    params = init_params(k_params, input_size, latent_size)
    # eps = randn(latent_size): single latent-sized vector broadcast over batch.
    eps = jax.random.normal(k_eps, (1, latent_size), jnp.float32)

    packed = pack_params(params, input_size, latent_size)
    recon, mu, logvar = vae_forward(x, packed, eps, input_size, latent_size)
    jax.block_until_ready((recon, mu, logvar))

    # Reference in plain JAX, mirroring the kernel's bf16-operand / f32-accumulate math.
    x2d = x.reshape(-1, input_size)
    w_mu, b_mu, w_lv, b_lv, w_dec, b_dec = params
    xb = x2d.astype(jnp.bfloat16).astype(jnp.float32)
    wmu_b = w_mu.astype(jnp.bfloat16).astype(jnp.float32)
    wlv_b = w_lv.astype(jnp.bfloat16).astype(jnp.float32)
    wdec_b = w_dec.astype(jnp.bfloat16).astype(jnp.float32)

    mu_ref = xb @ wmu_b + b_mu
    lv_ref = xb @ wlv_b + b_lv
    z_ref = mu_ref + eps * jnp.exp(0.5 * lv_ref)
    z_ref = z_ref.astype(jnp.bfloat16).astype(jnp.float32)
    recon_ref = z_ref @ wdec_b + b_dec

    assert jnp.allclose(mu, mu_ref, atol=2e-3, rtol=2e-3)
    assert jnp.allclose(logvar, lv_ref, atol=2e-3, rtol=2e-3)
    # recon is stored in bf16 -> looser tolerance.
    assert jnp.allclose(recon.astype(jnp.float32), recon_ref, atol=3e-2, rtol=3e-2)

    print("KERNEL_OK")
</pallas_src>

<mosaic_0001>
module attributes {stable_mosaic.version = 11 : i64} {
  func.func @vae_kernel(%arg0: i32, %arg1: memref<2x1024xf32, #tpu.memory_space<vmem>>, %arg2: memref<1024x256xbf16, #tpu.memory_space<vmem>>, %arg3: memref<1x256xf32, #tpu.memory_space<vmem>>, %arg4: memref<128x1024xbf16, #tpu.memory_space<vmem>>, %arg5: memref<1x1024xf32, #tpu.memory_space<vmem>>, %arg6: memref<1x128xf32, #tpu.memory_space<vmem>>, %arg7: memref<2x1024xbf16, #tpu.memory_space<vmem>>, %arg8: memref<2x256xf32, #tpu.memory_space<vmem>>) attributes {dimension_semantics = [#tpu.dimension_semantics<parallel>], iteration_bounds = array<i64: 1>, scalar_prefetch = 0 : i64, scratch_operands = 0 : i64, tpu.core_type = #tpu.core_type<tc>, window_params = [{transform_indices = @transform_0, window_bounds = array<i64: 2, 1024>}, {pipeline_mode = #tpu.pipeline_mode<synchronous>, transform_indices = @transform_1, window_bounds = array<i64: 1024, 256>}, {pipeline_mode = #tpu.pipeline_mode<synchronous>, transform_indices = @transform_2, window_bounds = array<i64: 1, 256>}, {pipeline_mode = #tpu.pipeline_mode<synchronous>, transform_indices = @transform_3, window_bounds = array<i64: 128, 1024>}, {pipeline_mode = #tpu.pipeline_mode<synchronous>, transform_indices = @transform_4, window_bounds = array<i64: 1, 1024>}, {pipeline_mode = #tpu.pipeline_mode<synchronous>, transform_indices = @transform_5, window_bounds = array<i64: 1, 128>}, {transform_indices = @transform_6, window_bounds = array<i64: 2, 1024>}, {transform_indices = @transform_7, window_bounds = array<i64: 2, 256>}]} {
    %c0 = arith.constant 0 : index
    %c0_0 = arith.constant 0 : index
    %0 = vector.load %arg1[%c0, %c0_0] : memref<2x1024xf32, #tpu.memory_space<vmem>>, vector<2x1024xf32>
    %1 = arith.truncf %0 : vector<2x1024xf32> to vector<2x1024xbf16>
    %c0_1 = arith.constant 0 : index
    %c0_2 = arith.constant 0 : index
    %2 = vector.load %arg2[%c0_1, %c0_2] : memref<1024x256xbf16, #tpu.memory_space<vmem>>, vector<1024x256xbf16>
    %cst = arith.constant dense<0.000000e+00> : vector<2x256xf32>
    %3 = tpu.matmul %1, %2, %cst {dimension_numbers = #tpu.dot_dimension_numbers<[1], [0], [0], [1], [0, 0, 1, 1], [], []>} : vector<2x1024xbf16>, vector<1024x256xbf16>, vector<2x256xf32> -> vector<2x256xf32>
    %c0_3 = arith.constant 0 : index
    %c0_4 = arith.constant 0 : index
    %4 = vector.load %arg3[%c0_3, %c0_4] : memref<1x256xf32, #tpu.memory_space<vmem>>, vector<1x256xf32>
    %5 = vector.broadcast %4 : vector<1x256xf32> to vector<2x256xf32>
    %6 = arith.addf %3, %5 : vector<2x256xf32>
    %7 = vector.extract_strided_slice %6 {offsets = [0, 0], sizes = [2, 128], strides = [1, 1]} : vector<2x256xf32> to vector<2x128xf32>
    %8 = vector.extract_strided_slice %6 {offsets = [0, 128], sizes = [2, 128], strides = [1, 1]} : vector<2x256xf32> to vector<2x128xf32>
    %c0_5 = arith.constant 0 : index
    %c0_6 = arith.constant 0 : index
    %9 = vector.load %arg6[%c0_5, %c0_6] : memref<1x128xf32, #tpu.memory_space<vmem>>, vector<1x128xf32>
    %cst_7 = arith.constant 5.000000e-01 : f32
    %10 = vector.broadcast %cst_7 : f32 to vector<2x128xf32>
    %11 = arith.mulf %10, %8 : vector<2x128xf32>
    %12 = math.exp %11 : vector<2x128xf32>
    %13 = vector.broadcast %9 : vector<1x128xf32> to vector<2x128xf32>
    %14 = arith.mulf %13, %12 : vector<2x128xf32>
    %15 = arith.addf %7, %14 : vector<2x128xf32>
    %16 = arith.truncf %15 : vector<2x128xf32> to vector<2x128xbf16>
    %c0_8 = arith.constant 0 : index
    %c0_9 = arith.constant 0 : index
    %17 = vector.load %arg4[%c0_8, %c0_9] : memref<128x1024xbf16, #tpu.memory_space<vmem>>, vector<128x1024xbf16>
    %cst_10 = arith.constant dense<0.000000e+00> : vector<2x1024xf32>
    %18 = tpu.matmul %16, %17, %cst_10 {dimension_numbers = #tpu.dot_dimension_numbers<[1], [0], [0], [1], [0, 0, 1, 1], [], []>} : vector<2x128xbf16>, vector<128x1024xbf16>, vector<2x1024xf32> -> vector<2x1024xf32>
    %c0_11 = arith.constant 0 : index
    %c0_12 = arith.constant 0 : index
    %19 = vector.load %arg5[%c0_11, %c0_12] : memref<1x1024xf32, #tpu.memory_space<vmem>>, vector<1x1024xf32>
    %20 = vector.broadcast %19 : vector<1x1024xf32> to vector<2x1024xf32>
    %21 = arith.addf %18, %20 : vector<2x1024xf32>
    %22 = arith.truncf %21 : vector<2x1024xf32> to vector<2x1024xbf16>
    %c0_13 = arith.constant 0 : index
    %c0_14 = arith.constant 0 : index
    %23 = vector.load %arg7[%c0_13, %c0_14] : memref<2x1024xbf16, #tpu.memory_space<vmem>>, vector<2x1024xbf16>
    tpu.vector_store %arg7[%c0_13, %c0_14], %22 {strides = array<i32>} : memref<2x1024xbf16, #tpu.memory_space<vmem>>, vector<2x1024xbf16>,
    %c0_15 = arith.constant 0 : index
    %c0_16 = arith.constant 0 : index
    %24 = vector.load %arg8[%c0_15, %c0_16] : memref<2x256xf32, #tpu.memory_space<vmem>>, vector<2x256xf32>
    tpu.vector_store %arg8[%c0_15, %c0_16], %6 {strides = array<i32>} : memref<2x256xf32, #tpu.memory_space<vmem>>, vector<2x256xf32>,
    return
  }
  func.func @transform_0(%arg0: i32) -> (i32, i32) {
    %c0_i32 = arith.constant 0 : i32
    %c0_i32_0 = arith.constant 0 : i32
    return %arg0, %c0_i32 : i32, i32
  }
  func.func @transform_1(%arg0: i32) -> (i32, i32) {
    %c0_i32 = arith.constant 0 : i32
    %c0_i32_0 = arith.constant 0 : i32
    %c0_i32_1 = arith.constant 0 : i32
    return %c0_i32, %c0_i32_0 : i32, i32
  }
  func.func @transform_2(%arg0: i32) -> (i32, i32) {
    %c0_i32 = arith.constant 0 : i32
    %c0_i32_0 = arith.constant 0 : i32
    %c0_i32_1 = arith.constant 0 : i32
    return %c0_i32, %c0_i32_0 : i32, i32
  }
  func.func @transform_3(%arg0: i32) -> (i32, i32) {
    %c0_i32 = arith.constant 0 : i32
    %c0_i32_0 = arith.constant 0 : i32
    %c0_i32_1 = arith.constant 0 : i32
    return %c0_i32, %c0_i32_0 : i32, i32
  }
  func.func @transform_4(%arg0: i32) -> (i32, i32) {
    %c0_i32 = arith.constant 0 : i32
    %c0_i32_0 = arith.constant 0 : i32
    %c0_i32_1 = arith.constant 0 : i32
    return %c0_i32, %c0_i32_0 : i32, i32
  }
  func.func @transform_5(%arg0: i32) -> (i32, i32) {
    %c0_i32 = arith.constant 0 : i32
    %c0_i32_0 = arith.constant 0 : i32
    %c0_i32_1 = arith.constant 0 : i32
    return %c0_i32, %c0_i32_0 : i32, i32
  }
  func.func @transform_6(%arg0: i32) -> (i32, i32) {
    %c0_i32 = arith.constant 0 : i32
    %c0_i32_0 = arith.constant 0 : i32
    return %arg0, %c0_i32 : i32, i32
  }
  func.func @transform_7(%arg0: i32) -> (i32, i32) {
    %c0_i32 = arith.constant 0 : i32
    %c0_i32_0 = arith.constant 0 : i32
    return %arg0, %c0_i32 : i32, i32
  }
}

</mosaic_0001>

<bundles_post_ra>
// kernel: tpu_custom_call.1
= control target key start
LH: loop header
LB: loop body
LE: loop exit
PB: predicated region body
PF: predicated region fallthrough
CT: control target
= control target key end

     0   :  { %13 = vsyncpa [#allocation3], 0  ;;  %s2499_s0 = inlined_call_operand.hbm [shape: f32[2,1024], index: 0, kind: input, shape index: {}]   ;;  %s2500_s1 = inlined_call_operand.hbm [shape: bf16[1024,256], index: 1, kind: input, shape index: {}]   ;;  %s2501_s2 = inlined_call_operand.vmem [shape: f32[1,256], index: 2, kind: input, shape index: {}]   ;;  %s2502_s3 = inlined_call_operand.hbm [shape: bf16[128,1024], index: 3, kind: input, shape index: {}]   ;;  %s2503_s4 = inlined_call_operand.vmem [shape: f32[1,1024], index: 4, kind: input, shape index: {}]   ;;  %s2504_s5 = inlined_call_operand.vmem [shape: f32[1,128], index: 5, kind: input, shape index: {}]   ;;  %s2505_s6 = inlined_call_operand.hbm [shape: bf16[2,1024], index: 6, kind: output, shape index: {0}]   ;;  %s2506_s7 = inlined_call_operand.hbm [shape: f32[2,256], index: 7, kind: output, shape index: {1}]  }
   0x1   :  { %14 = vsyncpa [#allocation6], 0 }
   0x2   :  { %15 = vsyncpa [#allocation4], 0 }
   0x3   :  { %16 = vsyncpa [#allocation10], 0  ;;  %s2313_s24 = smov [#allocation5]   ;;  %s2195_s28 = scalar_lea.hbm %s2500_s1, 16384 }
   0x4   :  { %s32_s25 = sshll.u32 %s2313_s24, 4  ;;  %p2196_p0 = scmp.ne.s32.totalorder %s2500_s1, %s2195_s28  ;;  %s33_s25 = int_to_ptr.vmem [resolvable:$true] %s32_s25 }
   0x5   :  { %p2199_p1 = scmp.lt.u32.totalorder %s2195_s28, %s2500_s1 }
   0x7   :  { %p2201_p2 = pnand %p2199_p1, %p2196_p0 }
   0x9   :  { %2204 = shalt.err (!%p2201_p2)
}
   0xa   :  { %s2205_s10 = scalar_lea.vmem %s33_s25, 16384  ;;  %p2210_p4 = scmp.lt.s32.totalorder %s33_s25, %s33_s25 }
   0xb   :  { %p2206_p3 = scmp.ne.s32.totalorder %s33_s25, %s2205_s10  ;;  %p2211_p5 = scmp.lt.s32.totalorder %s2205_s10, %s2205_s10 }
   0xd   :  { %p2212_p6 = por %p2211_p5, %p2210_p4 }
   0xf   :  { %p2213_p7 = pnand %p2212_p6, %p2206_p3 }
  0x11   :  { %2216 = shalt.err (!%p2213_p7)
}
  0x12   :  { %s2314_s11 = smov 128   ;;  %s2315_s12 = smov 8  }
  0x13   :  { %38 = dma.hbm_to_vmem [thread:$0]  %s2500_s1, 16384, %s33_s25, [#allocation6], %s2314_s11, %s2314_s11, %s2315_s12  }
  0x14   :  { %s2316_s15 = smov [#allocation2]   ;;  %s2317_s17 = smov [#allocation7]  }
  0x15   :  { %s23_s16 = sshll.u32 %s2316_s15, 4  ;;  %s46_s18 = sshll.u32 %s2317_s17, 4  ;;  %s24_s16 = int_to_ptr.vmem [resolvable:$true] %s23_s16  ;;  %s47_s18 = int_to_ptr.vmem [resolvable:$true] %s46_s18 }
  0x16   :  { %s2217_s21 = scalar_lea.hbm %s2499_s0, 256 }
  0x17   :  { %p2218_p8 = scmp.ne.s32.totalorder %s2499_s0, %s2217_s21  ;;  %p2221_p9 = scmp.lt.u32.totalorder %s2217_s21, %s2499_s0 }
  0x19   :  { %p2223_p10 = pnand %p2221_p9, %p2218_p8 }
  0x1b   :  { %2226 = shalt.err (!%p2223_p10)
}
  0x1c   :  { %s2227_s1 = scalar_lea.vmem %s24_s16, 256  ;;  %p2232_p12 = scmp.lt.s32.totalorder %s24_s16, %s24_s16 }
  0x1d   :  { %p2228_p11 = scmp.ne.s32.totalorder %s24_s16, %s2227_s1  ;;  %p2233_p13 = scmp.lt.s32.totalorder %s2227_s1, %s2227_s1 }
  0x1f   :  { %p2234_p0 = por %p2233_p13, %p2232_p12 }
  0x21   :  { %p2235_p1 = pnand %p2234_p0, %p2228_p11 }
  0x23   :  { %2238 = shalt.err (!%p2235_p1)
}
  0x24   :  { %26 = dma.hbm_to_vmem [thread:$0]  %s2499_s0, 256, %s24_s16, [#allocation3]  }
  0x25   :  { %s2239_s30 = scalar_lea.hbm %s2502_s3, 8192 }
  0x26   :  { %p2240_p2 = scmp.ne.s32.totalorder %s2502_s3, %s2239_s30  ;;  %p2243_p3 = scmp.lt.u32.totalorder %s2239_s30, %s2502_s3 }
  0x28   :  { %p2245_p4 = pnand %p2243_p3, %p2240_p2 }
  0x2a   :  { %2248 = shalt.err (!%p2245_p4)
}
  0x2b   :  { %s2249_s12 = scalar_lea.vmem %s47_s18, 8192  ;;  %p2254_p6 = scmp.lt.s32.totalorder %s47_s18, %s47_s18 }
  0x2c   :  { %p2250_p5 = scmp.ne.s32.totalorder %s47_s18, %s2249_s12  ;;  %p2255_p7 = scmp.lt.s32.totalorder %s2249_s12, %s2249_s12 }
  0x2e   :  { %p2256_p8 = por %p2255_p7, %p2254_p6 }
  0x30   :  { %p2257_p9 = pnand %p2256_p8, %p2250_p5 }
  0x32   :  { %2260 = shalt.err (!%p2257_p9)
}
  0x33   :  { %s2318_s0 = smov 512   ;;  %s2319_s13 = smov 32  }
  0x34   :  { %52 = dma.hbm_to_vmem [thread:$0]  %s2502_s3, 8192, %s47_s18, [#allocation6], %s2318_s0, %s2318_s0, %s2319_s13  }
  0x35   :  { %2305 = dma.done.wait [#allocation3], 256  }
  0x36   :  { %2306 = vsyncadd [#allocation3], 4294967040 }
  0x37   :  { %2307 = dma.done.wait [#allocation6], 24576  }
  0x38   :  { %2308 = vsyncadd [#allocation6], 4294942720  ;;  %v1999_v0 = vld [vmem:[#allocation5 + $0x104] ss:$8 sps:$4 sm:$0xff]   ;;  %v2001_v1 = vld [vmem:[#allocation5 + $0x100] ss:$8 sps:$4 sm:$0xff]   ;;  %v75_v11 = vlaneseq }
  0x39   :  { %942 = vmatprep.subr.bf16.mxu0 %v1999_v0  ;;  %v2002_v2 = vld [vmem:[#allocation5 + $0x114] ss:$8 sps:$4 sm:$0xff]   ;;  %v2004_v3 = vld [vmem:[#allocation5 + $0x110] ss:$8 sps:$4 sm:$0xff]   ;;  %v2005_v4 = vld [vmem:[#allocation5 + $0x124] ss:$8 sps:$4 sm:$0xff]  }
  0x3a   :  { %943 = vmatpush1.bf16.msra.mxu0 %v2001_v1  ;;  %v2007_v5 = vld [vmem:[#allocation5 + $0x120] ss:$8 sps:$4 sm:$0xff]   ;;  %v2008_v6 = vld [vmem:[#allocation5 + $0x134] ss:$8 sps:$4 sm:$0xff]   ;;  %v2010_v7 = vld [vmem:[#allocation5 + $0x130] ss:$8 sps:$4 sm:$0xff]  }
  0x3b   :  { %944 = vmatprep.subr.bf16.mxu0 %v2002_v2  ;;  %v2011_v8 = vld [vmem:[#allocation5 + $0x144] ss:$8 sps:$4 sm:$0xff]   ;;  %v2320_v9 = vmov 1983009808   ;;  %v2013_v12 = vld [vmem:[#allocation5 + $0x140] ss:$8 sps:$4 sm:$0xff]  }
  0x3c   :  { %v73_v10 = vunpack.c.l.s4 %v2320_v9  ;;  %v2014_v13 = vld [vmem:[#allocation5 + $0x154] ss:$8 sps:$4 sm:$0xff]   ;;  %v2401_v15 = vshrl.u32 %v75_v11, 7  ;;  %v2016_v16 = vld [vmem:[#allocation5 + $0x150] ss:$8 sps:$4 sm:$0xff]  }
  0x3d   :  { %v2017_v17 = vld [vmem:[#allocation5 + $0x164] ss:$8 sps:$4 sm:$0xff]   ;;  %v67_v19 = vld [vmem:[#allocation2] sm:$0xff]  ;;  %v2019_v21 = vld [vmem:[#allocation5 + $0x160] ss:$8 sps:$4 sm:$0xff]  }
  0x3e   :  { %945 = vmatpush1.bf16.msra.mxu0 %v2004_v3  ;;  %v74_v14 = vunpack.c.0.s8 %v73_v10  ;;  %v71_v20 = vcombine.high %v67_v19, %v67_v19  ;;  %v2020_v22 = vld [vmem:[#allocation5 + $0x174] ss:$8 sps:$4 sm:$0xff]   ;;  %v2022_v25 = vld [vmem:[#allocation5 + $0x170] ss:$8 sps:$4 sm:$0xff]   ;;  %v2023_v26 = vld [vmem:[#allocation5 + $0x184] ss:$8 sps:$4 sm:$0xff]  }
  0x3f   :  { %946 = vmatprep.subr.bf16.mxu0 %v2005_v4  ;;  %v2025_v28 = vld [vmem:[#allocation5 + $0x180] ss:$8 sps:$4 sm:$0xff]   ;;  %v2026_v29 = vld [vmem:[#allocation5 + $0x194] ss:$8 sps:$4 sm:$0xff]   ;;  %v2028_v30 = vld [vmem:[#allocation5 + $0x190] ss:$8 sps:$4 sm:$0xff]  }
  0x40   :  { %v2404_v18 = vsub.s32 %v74_v14, %v2401_v15  ;;  %v2029_v31 = vld [vmem:[#allocation5 + $0x1a4] ss:$8 sps:$4 sm:$0xff]   ;;  %v2031_v32 = vld [vmem:[#allocation5 + $0x1a0] ss:$8 sps:$4 sm:$0xff]   ;;  %v2032_v33 = vld [vmem:[#allocation5 + $0x1b4] ss:$8 sps:$4 sm:$0xff]  }
  0x41   :  { %v2093_v34 = vld [vmem:[#allocation5 + $0x4] ss:$8 sps:$4 sm:$0xff]   ;;  %v2095_v35 = vld [vmem:[#allocation5] ss:$8 sps:$4 sm:$0xff]   ;;  %v2034_v36 = vld [vmem:[#allocation5 + $0x1b0] ss:$8 sps:$4 sm:$0xff]  }
  0x42   :  { %947 = vmatpush1.bf16.msra.mxu0 %v2007_v5  ;;  %v2407_v23 = vrot.slane %v71_v20, %v2404_v18  ;;  %v2035_v37 = vld [vmem:[#allocation5 + $0x1c4] ss:$8 sps:$4 sm:$0xff]   ;;  %901 = vmatprep.subr.bf16.mxu1 %v2093_v34  ;;  %v2099_v38 = vld [vmem:[#allocation5 + $0x14] ss:$8 sps:$4 sm:$0xff]   ;;  %v2101_v39 = vld [vmem:[#allocation5 + $0x10] ss:$8 sps:$4 sm:$0xff]   ;;  %v2414_v50 = vrot.slane %v67_v19, %v2404_v18 }
  0x43   :  { %948 = vmatprep.subr.bf16.mxu0 %v2008_v6  ;;  %902 = vmatpush1.bf16.msra.mxu1 %v2095_v35  ;;  %v2037_v40 = vld [vmem:[#allocation5 + $0x1c0] ss:$8 sps:$4 sm:$0xff]   ;;  %v2038_v41 = vld [vmem:[#allocation5 + $0x1d4] ss:$8 sps:$4 sm:$0xff]   ;;  %v2105_v42 = vld [vmem:[#allocation5 + $0x24] ss:$8 sps:$4 sm:$0xff]  }
  0x44   :  { %v87_v24 = vcombine.high %v2407_v23, %v2407_v23  ;;  %903 = vmatprep.subr.bf16.mxu1 %v2099_v38  ;;  %v2107_v43 = vld [vmem:[#allocation5 + $0x20] ss:$8 sps:$4 sm:$0xff]   ;;  %v2111_v44 = vld [vmem:[#allocation5 + $0x34] ss:$8 sps:$4 sm:$0xff]   ;;  %v2040_v45 = vld [vmem:[#allocation5 + $0x1d0] ss:$8 sps:$4 sm:$0xff]   ;;  %v86_v54 = vcombine.high %v2414_v50, %v2414_v50  ;;  %v115_v62 = vpack.c.bf16 %v2407_v23, %v2407_v23 }
  0x45   :  { %v2041_v46 = vld [vmem:[#allocation5 + $0x1e4] ss:$8 sps:$4 sm:$0xff]   ;;  %v2411_v47 = vld [vmem:[#allocation2 + $0x8] sm:$0xff]  ;;  %v2043_v51 = vld [vmem:[#allocation5 + $0x1e0] ss:$8 sps:$4 sm:$0xff]  }
  0x46   :  { %949 = vmatpush1.bf16.msra.mxu0 %v2010_v7  ;;  %v116_v27 = vpack.c.bf16 %v87_v24, %v87_v24  ;;  %v2113_v48 = vld [vmem:[#allocation5 + $0x30] ss:$8 sps:$4 sm:$0xff]   ;;  %v2117_v49 = vld [vmem:[#allocation5 + $0x44] ss:$8 sps:$4 sm:$0xff]   ;;  %v2418_v52 = vrot.slane %v2411_v47, %v2404_v18  ;;  %v2044_v53 = vld [vmem:[#allocation5 + $0x1f4] ss:$8 sps:$4 sm:$0xff]   ;;  %v114_v57 = vpack.c.bf16 %v86_v54, %v86_v54 }
  0x47   :  { %950 = vmatprep.subr.bf16.mxu0 %v2011_v8  ;;  %904 = vmatpush1.bf16.msra.mxu1 %v2101_v39  ;;  %v2119_v55 = vld [vmem:[#allocation5 + $0x40] ss:$8 sps:$4 sm:$0xff]   ;;  %v2123_v56 = vld [vmem:[#allocation5 + $0x54] ss:$8 sps:$4 sm:$0xff]   ;;  %v2046_v58 = vld [vmem:[#allocation5 + $0x1f0] ss:$8 sps:$4 sm:$0xff]  }
  0x48   :  { %974 = vmatprep.mubr.bf16.mxu0 %v116_v27  ;;  %905 = vmatprep.subr.bf16.mxu1 %v2105_v42  ;;  %v103_v59 = vcombine.high %v2418_v52, %v2418_v52  ;;  %v2050_v60 = vld [vmem:[#allocation5 + $0x204] ss:$8 sps:$4 sm:$0xff]   ;;  %v2125_v61 = vld [vmem:[#allocation5 + $0x50] ss:$8 sps:$4 sm:$0xff]   ;;  %v2048_v0 = vld [vmem:[#allocation5 + $0x200] ss:$8 sps:$4 sm:$0xff]  }
  0x49   :  { %933 = vmatprep.mubr.bf16.mxu1 %v114_v57  ;;  %v2129_v63 = vld [vmem:[#allocation5 + $0x64] ss:$8 sps:$4 sm:$0xff]   ;;  %v2053_v2 = vld [vmem:[#allocation5 + $0x214] ss:$8 sps:$4 sm:$0xff]   ;;  %v2131_v3 = vld [vmem:[#allocation5 + $0x60] ss:$8 sps:$4 sm:$0xff]   ;;  %v88_v57 = vcombine.high %v2411_v47, %v2411_v47 }
  0x4a   :  { %951 = vmatpush1.bf16.msra.mxu0 %v2013_v12  ;;  %v118_v1 = vpack.c.bf16 %v103_v59, %v103_v59  ;;  %v2135_v4 = vld [vmem:[#allocation5 + $0x74] ss:$8 sps:$4 sm:$0xff]   ;;  %v2051_v5 = vld [vmem:[#allocation5 + $0x210] ss:$8 sps:$4 sm:$0xff]   ;;  %v2056_v6 = vld [vmem:[#allocation5 + $0x224] ss:$8 sps:$4 sm:$0xff]  }
  0x4b   :  { %952 = vmatprep.subr.bf16.mxu0 %v2014_v13  ;;  %906 = vmatpush1.bf16.msra.mxu1 %v2107_v43  ;;  %v2137_v7 = vld [vmem:[#allocation5 + $0x70] ss:$8 sps:$4 sm:$0xff]   ;;  %v2141_v8 = vld [vmem:[#allocation5 + $0x84] ss:$8 sps:$4 sm:$0xff]   ;;  %v2054_v9 = vld [vmem:[#allocation5 + $0x220] ss:$8 sps:$4 sm:$0xff]   ;;  %v2431_v59 = vrot.slane %v88_v57, %v2404_v18 }
  0x4c   :  { %907 = vmatprep.subr.bf16.mxu1 %v2111_v44  ;;  %v2059_v10 = vld [vmem:[#allocation5 + $0x234] ss:$8 sps:$4 sm:$0xff]   ;;  %v2143_v11 = vld [vmem:[#allocation5 + $0x80] ss:$8 sps:$4 sm:$0xff]   ;;  %v2057_v13 = vld [vmem:[#allocation5 + $0x230] ss:$8 sps:$4 sm:$0xff]  }
  0x4d   :  { %v2147_v12 = vld [vmem:[#allocation5 + $0x94] ss:$8 sps:$4 sm:$0xff]   ;;  %v2062_v14 = vld [vmem:[#allocation5 + $0x244] ss:$8 sps:$4 sm:$0xff]   ;;  %v2060_v19 = vld [vmem:[#allocation5 + $0x240] ss:$8 sps:$4 sm:$0xff]  }
  0x4e   :  { %953 = vmatpush1.bf16.msra.mxu0 %v2016_v16  ;;  %v2149_v16 = vld [vmem:[#allocation5 + $0x90] ss:$8 sps:$4 sm:$0xff]   ;;  %v2065_v20 = vld [vmem:[#allocation5 + $0x254] ss:$8 sps:$4 sm:$0xff]   ;;  %v2068_v24 = vld [vmem:[#allocation5 + $0x264] ss:$8 sps:$4 sm:$0xff]  }
  0x4f   :  { %954 = vmatprep.subr.bf16.mxu0 %v2017_v17  ;;  %908 = vmatpush1.bf16.msra.mxu1 %v2113_v48  ;;  %v2153_v17 = vld [vmem:[#allocation5 + $0xa4] ss:$8 sps:$4 sm:$0xff]   ;;  %v2063_v23 = vld [vmem:[#allocation5 + $0x250] ss:$8 sps:$4 sm:$0xff]   ;;  %v2066_v27 = vld [vmem:[#allocation5 + $0x260] ss:$8 sps:$4 sm:$0xff]   ;;  %v113_v48 = vpack.c.bf16 %v2414_v50, %v2414_v50 }
  0x50   :  { %909 = vmatprep.subr.bf16.mxu1 %v2117_v49  ;;  %v2177_v34 = vld [vmem:[#allocation5 + $0xe4] ss:$8 sps:$4 sm:$0xff]   ;;  %v2072_v35 = vld [vmem:[#allocation5 + $0x280] ss:$8 sps:$4 sm:$0xff]   ;;  %v2183_v38 = vld [vmem:[#allocation5 + $0xf4] ss:$8 sps:$4 sm:$0xff]  }
  0x51   :  { %v2075_v39 = vld [vmem:[#allocation5 + $0x290] ss:$8 sps:$4 sm:$0xff]   ;;  %v2080_v42 = vld [vmem:[#allocation5 + $0x2a4] ss:$8 sps:$4 sm:$0xff]   ;;  %v2084_v54 = vld [vmem:[#allocation5 + $0x2c0] ss:$8 sps:$4 sm:$0xff]  }
  0x52   :  { %955 = vmatpush1.bf16.msra.mxu0 %v2019_v21  ;;  %v2155_v21 = vld [vmem:[#allocation5 + $0xa0] ss:$8 sps:$4 sm:$0xff]   ;;  %v2185_v43 = vld [vmem:[#allocation5 + $0xf0] ss:$8 sps:$4 sm:$0xff]   ;;  %v2092_v50 = vld [vmem:[#allocation5 + $0x2e4] ss:$8 sps:$4 sm:$0xff]  }
  0x53   :  { %956 = vmatprep.subr.bf16.mxu0 %v2020_v22  ;;  %910 = vmatpush1.bf16.msra.mxu1 %v2119_v55  ;;  %v2159_v22 = vld [vmem:[#allocation5 + $0xb4] ss:$8 sps:$4 sm:$0xff]   ;;  %v2102_v47 = vld [vmem:[#allocation5 + $0x300] ss:$8 sps:$4 sm:$0xff]   ;;  %v2108_v18 = vld [vmem:[#allocation5 + $0x310] ss:$8 sps:$4 sm:$0xff]  }
  0x54   :  { %911 = vmatprep.subr.bf16.mxu1 %v2123_v56  ;;  %v2089_v55 = vld [vmem:[#allocation5 + $0x2d4] ss:$8 sps:$4 sm:$0xff]   ;;  %v2087_v56 = vld [vmem:[#allocation5 + $0x2d0] ss:$8 sps:$4 sm:$0xff]   ;;  %v1130_v57 = vld [vmem:[#allocation7 + $0x1a0] sm:$0xff] }
  0x56   :  { %957 = vmatpush1.bf16.msra.mxu0 %v2022_v25  ;;  %v2161_v25 = vld [vmem:[#allocation5 + $0xb0] ss:$8 sps:$4 sm:$0xff]  }
  0x57   :  { %958 = vmatprep.subr.bf16.mxu0 %v2023_v26  ;;  %912 = vmatpush1.bf16.msra.mxu1 %v2125_v61  ;;  %v2165_v26 = vld [vmem:[#allocation5 + $0xc4] ss:$8 sps:$4 sm:$0xff]   ;;  %v2096_v61 = vld [vmem:[#allocation5 + $0x2f0] ss:$8 sps:$4 sm:$0xff]  }
  0x58   :  { %913 = vmatprep.subr.bf16.mxu1 %v2129_v63  ;;  %v2104_v63 = vld [vmem:[#allocation5 + $0x304] ss:$8 sps:$4 sm:$0xff]  }
  0x5a   :  { %959 = vmatpush1.bf16.msra.mxu0 %v2025_v28  ;;  %v2071_v28 = vld [vmem:[#allocation5 + $0x274] ss:$8 sps:$4 sm:$0xff]  }
  0x5b   :  { %960 = vmatprep.subr.bf16.mxu0 %v2026_v29  ;;  %914 = vmatpush1.bf16.msra.mxu1 %v2131_v3  ;;  %v2167_v29 = vld [vmem:[#allocation5 + $0xc0] ss:$8 sps:$4 sm:$0xff]   ;;  %v2116_v3 = vld [vmem:[#allocation5 + $0x324] ss:$8 sps:$4 sm:$0xff]  }
  0x5c   :  { %915 = vmatprep.subr.bf16.mxu1 %v2135_v4  ;;  %v2114_v4 = vld [vmem:[#allocation5 + $0x320] ss:$8 sps:$4 sm:$0xff]  }
  0x5e   :  { %961 = vmatpush1.bf16.msra.mxu0 %v2028_v30  ;;  %v2171_v30 = vld [vmem:[#allocation5 + $0xd4] ss:$8 sps:$4 sm:$0xff]  }
  0x5f   :  { %962 = vmatprep.subr.bf16.mxu0 %v2029_v31  ;;  %916 = vmatpush1.bf16.msra.mxu1 %v2137_v7  ;;  %v2069_v31 = vld [vmem:[#allocation5 + $0x270] ss:$8 sps:$4 sm:$0xff]   ;;  %v2128_v7 = vld [vmem:[#allocation5 + $0x344] ss:$8 sps:$4 sm:$0xff]  }
  0x60   :  { %917 = vmatprep.subr.bf16.mxu1 %v2141_v8  ;;  %v2134_v8 = vld [vmem:[#allocation5 + $0x354] ss:$8 sps:$4 sm:$0xff]  }
  0x62   :  { %963 = vmatpush1.bf16.msra.mxu0 %v2031_v32  ;;  %v2074_v32 = vld [vmem:[#allocation5 + $0x284] ss:$8 sps:$4 sm:$0xff]  }
  0x63   :  { %964 = vmatprep.subr.bf16.mxu0 %v2032_v33  ;;  %918 = vmatpush1.bf16.msra.mxu1 %v2143_v11  ;;  %v2173_v33 = vld [vmem:[#allocation5 + $0xd0] ss:$8 sps:$4 sm:$0xff]   ;;  %v2138_v11 = vld [vmem:[#allocation5 + $0x360] ss:$8 sps:$4 sm:$0xff]  }
  0x64   :  { %919 = vmatprep.subr.bf16.mxu1 %v2147_v12  ;;  %v2146_v12 = vld [vmem:[#allocation5 + $0x374] ss:$8 sps:$4 sm:$0xff]  }
  0x66   :  { %965 = vmatpush1.bf16.msra.mxu0 %v2034_v36  ;;  %v2077_v36 = vld [vmem:[#allocation5 + $0x294] ss:$8 sps:$4 sm:$0xff]  }
  0x67   :  { %966 = vmatprep.subr.bf16.mxu0 %v2035_v37  ;;  %920 = vmatpush1.bf16.msra.mxu1 %v2149_v16  ;;  %v2179_v37 = vld [vmem:[#allocation5 + $0xe0] ss:$8 sps:$4 sm:$0xff]  }
  0x68   :  { %921 = vmatprep.subr.bf16.mxu1 %v2153_v17  ;;  %v2150_v16 = vld [vmem:[#allocation5 + $0x380] ss:$8 sps:$4 sm:$0xff]   ;;  %v2158_v17 = vld [vmem:[#allocation5 + $0x394] ss:$8 sps:$4 sm:$0xff]  }
  0x6a   :  { %967 = vmatpush1.bf16.msra.mxu0 %v2037_v40  ;;  %v1078_v40 = vld [vmem:[#allocation7] sm:$0xff] }
  0x6b   :  { %968 = vmatprep.subr.bf16.mxu0 %v2038_v41  ;;  %922 = vmatpush1.bf16.msra.mxu1 %v2155_v21  ;;  %v1082_v41 = vld [vmem:[#allocation7 + $0x20] sm:$0xff] }
  0x6c   :  { %923 = vmatprep.subr.bf16.mxu1 %v2159_v22  ;;  %v1907_v44 = vcombine.high %v1078_v40, %v1082_v41  ;;  %v1906_v49 = vcombine.low %v1078_v40, %v1082_v41  ;;  %v2162_v21 = vld [vmem:[#allocation5 + $0x3a0] ss:$8 sps:$4 sm:$0xff]   ;;  %v2170_v22 = vld [vmem:[#allocation5 + $0x3b4] ss:$8 sps:$4 sm:$0xff]  }
  0x6d   :  { %v1102_v41 = vld [vmem:[#allocation7 + $0xc0] sm:$0xff] }
  0x6e   :  { %969 = vmatpush1.bf16.msra.mxu0 %v2040_v45  ;;  %v2078_v45 = vld [vmem:[#allocation5 + $0x2a0] ss:$8 sps:$4 sm:$0xff]  }
  0x6f   :  { %970 = vmatprep.subr.bf16.mxu0 %v2041_v46  ;;  %924 = vmatpush1.bf16.msra.mxu1 %v2161_v25  ;;  %v2083_v46 = vld [vmem:[#allocation5 + $0x2b4] ss:$8 sps:$4 sm:$0xff]   ;;  %v2174_v25 = vld [vmem:[#allocation5 + $0x3c0] ss:$8 sps:$4 sm:$0xff]  }
  0x70   :  { %925 = vmatprep.subr.bf16.mxu1 %v2165_v26  ;;  %v2182_v26 = vld [vmem:[#allocation5 + $0x3d4] ss:$8 sps:$4 sm:$0xff]  }
  0x72   :  { %971 = vmatpush1.bf16.msra.mxu0 %v2043_v51  ;;  %v2081_v51 = vld [vmem:[#allocation5 + $0x2b0] ss:$8 sps:$4 sm:$0xff]  }
  0x73   :  { %972 = vmatprep.subr.bf16.mxu0 %v2044_v53  ;;  %926 = vmatpush1.bf16.msra.mxu1 %v2167_v29  ;;  %v2086_v53 = vld [vmem:[#allocation5 + $0x2c4] ss:$8 sps:$4 sm:$0xff]   ;;  %v2186_v29 = vld [vmem:[#allocation5 + $0x3e0] ss:$8 sps:$4 sm:$0xff]  }
  0x74   :  { %927 = vmatprep.subr.bf16.mxu1 %v2171_v30  ;;  %v2191_v30 = vld [vmem:[#allocation5 + $0x3f4] ss:$8 sps:$4 sm:$0xff]  }
  0x76   :  { %973 = vmatpush1.bf16.msra.mxu0 %v2046_v58  ;;  %v2090_v58 = vld [vmem:[#allocation5 + $0x2e0] ss:$8 sps:$4 sm:$0xff]  }
  0x77   :  { %983 = vmatprep.subr.bf16.mxu0 %v2050_v60  ;;  %928 = vmatpush1.bf16.msra.mxu1 %v2173_v33  ;;  %v2098_v60 = vld [vmem:[#allocation5 + $0x2f4] ss:$8 sps:$4 sm:$0xff]   ;;  %v1086_v33 = vld [vmem:[#allocation7 + $0x40] sm:$0xff] }
  0x78   :  { %929 = vmatprep.subr.bf16.mxu1 %v2177_v34  ;;  %v1090_v34 = vld [vmem:[#allocation7 + $0x60] sm:$0xff] }
  0x79   :  { %975 = vmatmul.mubr.bf16.vlgmr.msra.gmra.mrb[0].mxu0 %v115_v62  ;;  %v104_v62 = vcombine.high %v2431_v59, %v2431_v59 }
  0x7a   :  { %984 = vmatpush1.bf16.msra.mxu0 %v2048_v0  ;;  %1015 = vmatprep.mubr.bf16.mxu0 %v118_v1  ;;  %v117_v0 = vpack.c.bf16 %v2418_v52, %v2418_v52  ;;  %v2126_v52 = vld [vmem:[#allocation5 + $0x340] ss:$8 sps:$4 sm:$0xff]  }
  0x7b   :  { %985 = vmatprep.subr.bf16.mxu0 %v2053_v2  ;;  %930 = vmatpush1.bf16.msra.mxu1 %v2179_v37  ;;  %v120_v1 = vpack.c.bf16 %v104_v62, %v104_v62  ;;  %v2110_v2 = vld [vmem:[#allocation5 + $0x314] ss:$8 sps:$4 sm:$0xff]   ;;  %v1094_v37 = vld [vmem:[#allocation7 + $0x80] sm:$0xff] }
  0x7c   :  { %931 = vmatprep.subr.bf16.mxu1 %v2183_v38  ;;  %v1098_v38 = vld [vmem:[#allocation7 + $0xa0] sm:$0xff] }
  0x7d   :  { %v1922_v40 = vcombine.low %v1094_v37, %v1098_v38  ;;  %v1138_v62 = vld [vmem:[#allocation7 + $0x1e0] sm:$0xff] }
  0x7e   :  { %986 = vmatpush1.bf16.msra.mxu0 %v2051_v5  ;;  %v2122_v5 = vld [vmem:[#allocation5 + $0x334] ss:$8 sps:$4 sm:$0xff]  }
  0x7f   :  { %987 = vmatprep.subr.bf16.mxu0 %v2056_v6  ;;  %932 = vmatpush1.bf16.msra.mxu1 %v2185_v43  ;;  %v2120_v6 = vld [vmem:[#allocation5 + $0x330] ss:$8 sps:$4 sm:$0xff]  }
  0x80   :  { %1504 = vmatprep.subr.bf16.mxu1 %v1907_v44 }
  0x82   :  { %988 = vmatpush1.bf16.msra.mxu0 %v2054_v9  ;;  %934 = vmatmul.mubr.bf16.vlgmr.msra.gmra.mrb[0].mxu1 %v113_v48  ;;  %v2132_v9 = vld [vmem:[#allocation5 + $0x350] ss:$8 sps:$4 sm:$0xff]  }
  0x83   :  { %989 = vmatprep.subr.bf16.mxu0 %v2059_v10  ;;  %1505 = vmatpush1.bf16.msra.mxu1 %v1906_v49  ;;  %v2140_v10 = vld [vmem:[#allocation5 + $0x364] ss:$8 sps:$4 sm:$0xff]  }
  0x86   :  { %990 = vmatpush1.bf16.msra.mxu0 %v2057_v13  ;;  %v2144_v13 = vld [vmem:[#allocation5 + $0x370] ss:$8 sps:$4 sm:$0xff]  }
  0x87   :  { %991 = vmatprep.subr.bf16.mxu0 %v2062_v14  ;;  %v2152_v14 = vld [vmem:[#allocation5 + $0x384] ss:$8 sps:$4 sm:$0xff]  }
  0x8a   :  { %992 = vmatpush1.bf16.msra.mxu0 %v2060_v19  ;;  %v2156_v19 = vld [vmem:[#allocation5 + $0x390] ss:$8 sps:$4 sm:$0xff]  }
  0x8b   :  { %993 = vmatprep.subr.bf16.mxu0 %v2065_v20  ;;  %v2164_v20 = vld [vmem:[#allocation5 + $0x3a4] ss:$8 sps:$4 sm:$0xff]  }
  0x8e   :  { %994 = vmatpush1.bf16.msra.mxu0 %v2063_v23  ;;  %v2168_v23 = vld [vmem:[#allocation5 + $0x3b0] ss:$8 sps:$4 sm:$0xff]  }
  0x8f   :  { %995 = vmatprep.subr.bf16.mxu0 %v2068_v24  ;;  %v2176_v24 = vld [vmem:[#allocation5 + $0x3c4] ss:$8 sps:$4 sm:$0xff]  }
  0x92   :  { %996 = vmatpush1.bf16.msra.mxu0 %v2066_v27  ;;  %v2180_v27 = vld [vmem:[#allocation5 + $0x3d0] ss:$8 sps:$4 sm:$0xff]  }
  0x93   :  { %997 = vmatprep.subr.bf16.mxu0 %v2071_v28  ;;  %v2188_v28 = vld [vmem:[#allocation5 + $0x3e4] ss:$8 sps:$4 sm:$0xff]  }
  0x96   :  { %998 = vmatpush1.bf16.msra.mxu0 %v2069_v31  ;;  %v2189_v31 = vld [vmem:[#allocation5 + $0x3f0] ss:$8 sps:$4 sm:$0xff]  }
  0x97   :  { %999 = vmatprep.subr.bf16.mxu0 %v2074_v32  ;;  %v119_v32 = vpack.c.bf16 %v2431_v59, %v2431_v59  ;;  %v1079_v59 = vld [vmem:[#allocation7 + $0x8] sm:$0xff] }
  0x9a   :  { %1000 = vmatpush1.bf16.msra.mxu0 %v2072_v35  ;;  %v1914_v35 = vcombine.low %v1086_v33, %v1090_v34 }
  0x9b   :  { %1001 = vmatprep.subr.bf16.mxu0 %v2077_v36  ;;  %v1915_v36 = vcombine.high %v1086_v33, %v1090_v34 }
  0x9d   :  { %1506 = vmatprep.subr.bf16.mxu1 %v1915_v36  ;;  %v1107_v36 = vld [vmem:[#allocation7 + $0xe8] sm:$0xff] }
  0x9e   :  { %1002 = vmatpush1.bf16.msra.mxu0 %v2075_v39  ;;  %1507 = vmatpush1.bf16.msra.mxu1 %v1914_v35  ;;  %v1923_v39 = vcombine.high %v1094_v37, %v1098_v38  ;;  %v1103_v35 = vld [vmem:[#allocation7 + $0xc8] sm:$0xff] }
  0x9f   :  { %1003 = vmatprep.subr.bf16.mxu0 %v2080_v42  ;;  %v1106_v42 = vld [vmem:[#allocation7 + $0xe0] sm:$0xff]  ;;  %v1933_v38 = vcombine.high %v1103_v35, %v1107_v36 }
  0xa0   :  { %1508 = vmatprep.subr.bf16.mxu1 %v1923_v39  ;;  %v1931_v43 = vcombine.high %v1102_v41, %v1106_v42  ;;  %v1930_v44 = vcombine.low %v1102_v41, %v1106_v42  ;;  %v1111_v39 = vld [vmem:[#allocation7 + $0x108] sm:$0xff]  ;;  %v1932_v41 = vcombine.low %v1103_v35, %v1107_v36  ;;  %v1097_v36 = vld [vmem:[#allocation7 + $0x98] sm:$0xff] }
  0xa2   :  { %1004 = vmatpush1.bf16.msra.mxu0 %v2078_v45  ;;  %1509 = vmatpush1.bf16.msra.mxu1 %v1922_v40  ;;  %v1110_v45 = vld [vmem:[#allocation7 + $0x100] sm:$0xff]  ;;  %v1115_v40 = vld [vmem:[#allocation7 + $0x128] sm:$0xff] }
  0xa3   :  { %1005 = vmatprep.subr.bf16.mxu0 %v2083_v46  ;;  %1510 = vmatprep.subr.bf16.mxu1 %v1931_v43  ;;  %v1114_v46 = vld [vmem:[#allocation7 + $0x120] sm:$0xff]  ;;  %v1941_v42 = vcombine.high %v1111_v39, %v1115_v40  ;;  %v1119_v43 = vld [vmem:[#allocation7 + $0x148] sm:$0xff] }
  0xa4   :  { %v1939_v48 = vcombine.high %v1110_v45, %v1114_v46  ;;  %v1938_v49 = vcombine.low %v1110_v45, %v1114_v46  ;;  %v1940_v45 = vcombine.low %v1111_v39, %v1115_v40  ;;  %v1105_v40 = vld [vmem:[#allocation7 + $0xd8] sm:$0xff] }
  0xa6   :  { %1006 = vmatpush1.bf16.msra.mxu0 %v2081_v51  ;;  %1511 = vmatpush1.bf16.msra.mxu1 %v1930_v44  ;;  %v1118_v51 = vld [vmem:[#allocation7 + $0x140] sm:$0xff]  ;;  %v1123_v44 = vld [vmem:[#allocation7 + $0x168] sm:$0xff] }
  0xa7   :  { %1007 = vmatprep.subr.bf16.mxu0 %v2086_v53  ;;  %1512 = vmatprep.subr.bf16.mxu1 %v1939_v48  ;;  %v1122_v53 = vld [vmem:[#allocation7 + $0x160] sm:$0xff]  ;;  %v1949_v46 = vcombine.high %v1119_v43, %v1123_v44  ;;  %v1127_v48 = vld [vmem:[#allocation7 + $0x188] sm:$0xff] }
  0xaa   :  { %1008 = vmatpush1.bf16.msra.mxu0 %v2084_v54  ;;  %v1126_v54 = vld [vmem:[#allocation7 + $0x180] sm:$0xff]  ;;  %1513 = vmatpush1.bf16.msra.mxu1 %v1938_v49  ;;  %v1131_v49 = vld [vmem:[#allocation7 + $0x1a8] sm:$0xff] }
  0xab   :  { %1009 = vmatprep.subr.bf16.mxu0 %v2089_v55  ;;  %v1946_v55 = vcombine.low %v1118_v51, %v1122_v53 }
  0xae   :  { %1010 = vmatpush1.bf16.msra.mxu0 %v2087_v56  ;;  %v1947_v56 = vcombine.high %v1118_v51, %v1122_v53  ;;  %v1948_v51 = vcombine.low %v1119_v43, %v1123_v44  ;;  %v1957_v53 = vcombine.high %v1127_v48, %v1131_v49  ;;  %v1113_v44 = vld [vmem:[#allocation7 + $0x118] sm:$0xff] }
  0xaf   :  { %1011 = vmatprep.subr.bf16.mxu0 %v2092_v50  ;;  %v2321_v50 = vmov 0  }
  0xb0   :  { %1536 = vmatprep.mubr.bf16.mxu1 %v2321_v50  ;;  %1514 = vmatprep.subr.bf16.mxu1 %v1947_v56  ;;  %v1956_v56 = vcombine.low %v1127_v48, %v1131_v49  ;;  %v1121_v49 = vld [vmem:[#allocation7 + $0x158] sm:$0xff] }
  0xb1   :  { %1515 = vmatpush1.bf16.msra.mxu1 %v1946_v55  ;;  %v1139_v55 = vld [vmem:[#allocation7 + $0x1e8] sm:$0xff] }
  0xb2   :  { %1012 = vmatpush1.bf16.msra.mxu0 %v2090_v58  ;;  %v1955_v58 = vcombine.high %v1126_v54, %v1130_v57 }
  0xb3   :  { %1013 = vmatprep.subr.bf16.mxu0 %v2098_v60  ;;  %v1083_v60 = vld [vmem:[#allocation7 + $0x28] sm:$0xff] }
  0xb4   :  { %1516 = vmatprep.subr.bf16.mxu1 %v1955_v58  ;;  %v1080_v58 = vld [vmem:[#allocation7 + $0x10] sm:$0xff] }
  0xb6   :  { %1014 = vmatpush1.bf16.msra.mxu0 %v2096_v61  ;;  %v1134_v61 = vld [vmem:[#allocation7 + $0x1c0] sm:$0xff] }
  0xb7   :  { %1024 = vmatprep.subr.bf16.mxu0 %v2104_v63  ;;  %v1908_v63 = vcombine.low %v1079_v59, %v1083_v60 }
  0xb9   :  { %1016 = vmatmul.mubr.bf16.vlgmr.msra.gmra.mrb[0].mxu0 %v117_v0  ;;  %v1954_v0 = vcombine.low %v1126_v54, %v1130_v57  ;;  %v1135_v54 = vld [vmem:[#allocation7 + $0x1c8] sm:$0xff] }
  0xba   :  { %1025 = vmatpush1.bf16.msra.mxu0 %v2102_v47  ;;  %1056 = vmatprep.mubr.bf16.mxu0 %v120_v1  ;;  %v1963_v47 = vcombine.high %v1134_v61, %v1138_v62  ;;  %v1962_v1 = vcombine.low %v1134_v61, %v1138_v62  ;;  %v1965_v57 = vcombine.high %v1135_v54, %v1139_v55  ;;  %v1088_v62 = vld [vmem:[#allocation7 + $0x50] sm:$0xff] }
  0xbb   :  { %1026 = vmatprep.subr.bf16.mxu0 %v2110_v2  ;;  %1517 = vmatpush1.bf16.msra.mxu1 %v1954_v0  ;;  %v1909_v2 = vcombine.high %v1079_v59, %v1083_v60  ;;  %v1084_v59 = vld [vmem:[#allocation7 + $0x30] sm:$0xff]  ;;  %v1964_v60 = vcombine.low %v1135_v54, %v1139_v55  ;;  %v1129_v54 = vld [vmem:[#allocation7 + $0x198] sm:$0xff] }
  0xbc   :  { %1518 = vmatprep.subr.bf16.mxu1 %v1963_v47  ;;  %v1911_v61 = vcombine.high %v1080_v58, %v1084_v59  ;;  %v1910_v0 = vcombine.low %v1080_v58, %v1084_v59  ;;  %v1133_v55 = vld [vmem:[#allocation7 + $0x1b8] sm:$0xff] }
  0xbd   :  { %v1137_v58 = vld [vmem:[#allocation7 + $0x1d8] sm:$0xff] }
  0xbe   :  { %1027 = vmatpush1.bf16.msra.mxu0 %v2108_v18  ;;  %v1141_v59 = vld [vmem:[#allocation7 + $0x1f8] sm:$0xff] }
  0xbf   :  { %1028 = vmatprep.subr.bf16.mxu0 %v2116_v3  ;;  %1519 = vmatpush1.bf16.msra.mxu1 %v1962_v1  ;;  %v1096_v1 = vld [vmem:[#allocation7 + $0x90] sm:$0xff] }
  0xc0   :  { %1545 = vmatprep.subr.bf16.mxu1 %v1909_v2  ;;  %v1100_v2 = vld [vmem:[#allocation7 + $0xb0] sm:$0xff] }
  0xc2   :  { %1029 = vmatpush1.bf16.msra.mxu0 %v2114_v4 }
  0xc3   :  { %1030 = vmatprep.subr.bf16.mxu0 %v2122_v5 }
  0xc6   :  { %1031 = vmatpush1.bf16.msra.mxu0 %v2120_v6  ;;  %v253_v6 = vsub.s32 0, %v2401_v15 }
  0xc7   :  { %1032 = vmatprep.subr.bf16.mxu0 %v2128_v7  ;;  %v249_v7 = vld [vmem:[%s2501_s2] sm:$0x3] }
  0xca   :  { %1033 = vmatpush1.bf16.msra.mxu0 %v2126_v52  ;;  %v257_v52 = vsub.s32 1, %v2401_v15 }
  0xcb   :  { %1034 = vmatprep.subr.bf16.mxu0 %v2134_v8  ;;  %v254_v8 = vrot.slane %v249_v7, %v253_v6 }
  0xce   :  { %1035 = vmatpush1.bf16.msra.mxu0 %v2132_v9  ;;  %v258_v9 = vrot.slane %v249_v7, %v257_v52  ;;  %v1926_v7 = vcombine.low %v1096_v1, %v1100_v2 }
  0xcf   :  { %1036 = vmatprep.subr.bf16.mxu0 %v2140_v10 }
  0xd2   :  { %1037 = vmatpush1.bf16.msra.mxu0 %v2138_v11 }
  0xd3   :  { %1038 = vmatprep.subr.bf16.mxu0 %v2146_v12 }
  0xd6   :  { %1039 = vmatpush1.bf16.msra.mxu0 %v2144_v13 }
  0xd7   :  { %1040 = vmatprep.subr.bf16.mxu0 %v2152_v14 }
  0xda   :  { %1041 = vmatpush1.bf16.msra.mxu0 %v2150_v16 }
  0xdb   :  { %1042 = vmatprep.subr.bf16.mxu0 %v2158_v17 }
  0xde   :  { %1043 = vmatpush1.bf16.msra.mxu0 %v2156_v19 }
  0xdf   :  { %1044 = vmatprep.subr.bf16.mxu0 %v2164_v20 }
  0xe2   :  { %1045 = vmatpush1.bf16.msra.mxu0 %v2162_v21 }
  0xe3   :  { %1046 = vmatprep.subr.bf16.mxu0 %v2170_v22 }
  0xe6   :  { %1047 = vmatpush1.bf16.msra.mxu0 %v2168_v23  ;;  %v1905_v23 = vld [vmem:[%s2504_s5] ss:$0 sm:$0xff]  ;;  %s2322_s5 = smov [#allocation9]  }
  0xe7   :  { %1048 = vmatprep.subr.bf16.mxu0 %v2176_v24  ;;  %s1763_s18 = sshll.u32 %s2322_s5, 4  ;;  %s1764_s18 = int_to_ptr.vmem [resolvable:$true] %s1763_s18 }
  0xe8   :  { %s2261_s19 = scalar_lea.vmem %s1764_s18, 64  ;;  %p2266_p11 = scmp.lt.s32.totalorder %s1764_s18, %s1764_s18 }
  0xe9   :  { %p2262_p10 = scmp.ne.s32.totalorder %s1764_s18, %s2261_s19  ;;  %p2267_p12 = scmp.lt.s32.totalorder %s2261_s19, %s2261_s19 }
  0xea   :  { %1049 = vmatpush1.bf16.msra.mxu0 %v2174_v25 }
  0xeb   :  { %1050 = vmatprep.subr.bf16.mxu0 %v2182_v26  ;;  %v1087_v26 = vld [vmem:[#allocation7 + $0x48] sm:$0xff]  ;;  %p2268_p13 = por %p2267_p12, %p2266_p11 }
  0xed   :  { %p2269_p0 = pnand %p2268_p13, %p2262_p10 }
  0xee   :  { %1051 = vmatpush1.bf16.msra.mxu0 %v2180_v27  ;;  %v1091_v27 = vld [vmem:[#allocation7 + $0x68] sm:$0xff] }
  0xef   :  { %1052 = vmatprep.subr.bf16.mxu0 %v2188_v28  ;;  %v1916_v33 = vcombine.low %v1087_v26, %v1091_v27 }
  0xf2   :  { %1053 = vmatpush1.bf16.msra.mxu0 %v2186_v29 }
  0xf3   :  { %1054 = vmatprep.subr.bf16.mxu0 %v2191_v30  ;;  %v1917_v30 = vcombine.high %v1087_v26, %v1091_v27  ;;  %v1081_v27 = vld [vmem:[#allocation7 + $0x18] sm:$0xff] }
  0xf6   :  { %1055 = vmatpush1.bf16.msra.mxu0 %v2189_v31  ;;  %v1095_v31 = vld [vmem:[#allocation7 + $0x88] sm:$0xff] }
  0xf9   :  { %1057 = vmatmul.mubr.bf16.vlgmr.msra.gmra.mrb[0].mxu0 %v119_v32  ;;  %v1099_v32 = vld [vmem:[#allocation7 + $0xa8] sm:$0xff] }
  0xfa   :  { %v1925_v34 = vcombine.high %v1095_v31, %v1099_v32  ;;  %v1924_v37 = vcombine.low %v1095_v31, %v1099_v32  ;;  %v1089_v32 = vld [vmem:[#allocation7 + $0x58] sm:$0xff] }
 0x155   :  { %v935_v18 = vpop.f32.mrb[0].mxu1 }
 0x156   :  { %v937_v3 = vpop.f32.mrb[1].mxu1  ;;  %v936_v10 = vadd.f32 %v935_v18, %v254_v8 }
 0x157   :  { %v939_v4 = vpop.f32.mrb[2].mxu1  ;;  %v938_v11 = vadd.f32 %v937_v3, %v258_v9  ;;  %v1927_v3 = vcombine.high %v1096_v1, %v1100_v2  ;;  %v1112_v9 = vld [vmem:[#allocation7 + $0x110] sm:$0xff] }
 0x158   :  { %v940_v5 = vpop.f32.mrb[3].mxu1  ;;  %v1104_v4 = vld [vmem:[#allocation7 + $0xd0] sm:$0xff] }
 0x159   :  { %v1108_v5 = vld [vmem:[#allocation7 + $0xf0] sm:$0xff] }
 0x15a   :  { %v1935_v8 = vcombine.high %v1104_v4, %v1108_v5 }
 0x1cc   :  { %v1058_v12 = vpop.f32.mrb[0].mxu0 }
 0x1cd   :  { %v1976_v13 = vadd.f32 %v1058_v12, %v936_v10  ;;  %v1060_v14 = vpop.f32.mrb[1].mxu0  ;;  %v1116_v10 = vld [vmem:[#allocation7 + $0x130] sm:$0xff] }
 0x1ce   :  { %v1978_v16 = vadd.f32 %v1060_v14, %v938_v11  ;;  %v1062_v17 = vpop.f32.mrb[2].mxu0  ;;  %v1934_v11 = vcombine.low %v1104_v4, %v1108_v5  ;;  %v1943_v12 = vcombine.high %v1112_v9, %v1116_v10  ;;  %v1124_v14 = vld [vmem:[#allocation7 + $0x170] sm:$0xff] }
 0x1cf   :  { %v1063_v19 = vpop.f32.mrb[3].mxu0 }
 0x1d0   :  { %v1066_v20 = vmul.f32 0.5, %v1978_v16  ;;  %v1737_v21 = vcombine.low %v1976_v13, %v1978_v16  ;;  %v1942_v16 = vcombine.low %v1112_v9, %v1116_v10  ;;  %v1128_v19 = vld [vmem:[#allocation7 + $0x190] sm:$0xff] }
 0x1d2   :  { %v1067_v22 = vmul.f32 1.442695, %v1066_v20  ;;  %1974 = vst.sshfl [vmem:[#allocation9] sm:$0x33 pattern:$0x76325410] %v1737_v21 }
 0x1d3   :  { %v1132_v20 = vld [vmem:[#allocation7 + $0x1b0] sm:$0xff] }
 0x1d4   :  { %2193 = vpow2.f32 %v1067_v22  ;;  %v1959_v22 = vcombine.high %v1128_v19, %v1132_v20 }
 0x1de   :  { %v2194_v24 = vpop.eup %2193 }
 0x1df   :  { %v1075_v25 = vmul.f32 %v2194_v24, %v1905_v23  ;;  %v1136_v23 = vld [vmem:[#allocation7 + $0x1d0] sm:$0xff] }
 0x1e0   :  { %v1140_v24 = vld [vmem:[#allocation7 + $0x1f0] sm:$0xff] }
 0x1e1   :  { %v1076_v28 = vadd.f32 %v1976_v13, %v1075_v25  ;;  %v1120_v13 = vld [vmem:[#allocation7 + $0x150] sm:$0xff]  ;;  %v1958_v25 = vcombine.low %v1128_v19, %v1132_v20  ;;  %v1967_v26 = vcombine.high %v1136_v23, %v1140_v24 }
 0x1e2   :  { %v1951_v17 = vcombine.high %v1120_v13, %v1124_v14  ;;  %v1950_v21 = vcombine.low %v1120_v13, %v1124_v14 }
 0x1e3   :  { %v2452_v29 = vpack.c.bf16 %v1076_v28, %v1076_v28  ;;  %v1085_v28 = vld [vmem:[#allocation7 + $0x38] sm:$0xff] }
 0x1e4   :  { %v1913_v31 = vcombine.high %v1081_v27, %v1085_v28 }
 0x1e5   :  { %1537 = vmatmul.mubr.bf16.vlgmr.msra.gmra.mrb[4].mxu1 %v2452_v29 }
 0x1e6   :  { %1546 = vmatpush1.bf16.msra.mxu1 %v1908_v63  ;;  %1577 = vmatprep.mubr.bf16.mxu1 %v2321_v50  ;;  %v1092_v63 = vld [vmem:[#allocation7 + $0x70] sm:$0xff] }
 0x1e7   :  { %1547 = vmatprep.subr.bf16.mxu1 %v1917_v30  ;;  %v1919_v47 = vcombine.high %v1088_v62, %v1092_v63  ;;  %v1918_v18 = vcombine.low %v1088_v62, %v1092_v63  ;;  %v1966_v30 = vcombine.low %v1136_v23, %v1140_v24  ;;  %v1968_v62 = vcombine.low %v1137_v58, %v1141_v59 }
 0x1ea   :  { %1548 = vmatpush1.bf16.msra.mxu1 %v1916_v33  ;;  %v1093_v33 = vld [vmem:[#allocation7 + $0x78] sm:$0xff] }
 0x1eb   :  { %1549 = vmatprep.subr.bf16.mxu1 %v1925_v34  ;;  %v1912_v34 = vcombine.low %v1081_v27, %v1085_v28  ;;  %v1921_v35 = vcombine.high %v1089_v32, %v1093_v33 }
 0x1ee   :  { %1550 = vmatpush1.bf16.msra.mxu1 %v1924_v37  ;;  %v1101_v37 = vld [vmem:[#allocation7 + $0xb8] sm:$0xff] }
 0x1ef   :  { %1551 = vmatprep.subr.bf16.mxu1 %v1933_v38  ;;  %v1920_v38 = vcombine.low %v1089_v32, %v1093_v33  ;;  %v1929_v39 = vcombine.high %v1097_v36, %v1101_v37 }
 0x1f2   :  { %1552 = vmatpush1.bf16.msra.mxu1 %v1932_v41  ;;  %v1109_v41 = vld [vmem:[#allocation7 + $0xf8] sm:$0xff] }
 0x1f3   :  { %1553 = vmatprep.subr.bf16.mxu1 %v1941_v42  ;;  %v1928_v42 = vcombine.low %v1097_v36, %v1101_v37  ;;  %v1937_v43 = vcombine.high %v1105_v40, %v1109_v41 }
 0x1f6   :  { %1554 = vmatpush1.bf16.msra.mxu1 %v1940_v45  ;;  %v1117_v45 = vld [vmem:[#allocation7 + $0x138] sm:$0xff] }
 0x1f7   :  { %1555 = vmatprep.subr.bf16.mxu1 %v1949_v46  ;;  %v1936_v46 = vcombine.low %v1105_v40, %v1109_v41  ;;  %v1945_v48 = vcombine.high %v1113_v44, %v1117_v45 }
 0x1fa   :  { %1556 = vmatpush1.bf16.msra.mxu1 %v1948_v51  ;;  %v1125_v51 = vld [vmem:[#allocation7 + $0x178] sm:$0xff] }
 0x1fb   :  { %1557 = vmatprep.subr.bf16.mxu1 %v1957_v53  ;;  %v1944_v53 = vcombine.low %v1113_v44, %v1117_v45 }
 0x1fe   :  { %1558 = vmatpush1.bf16.msra.mxu1 %v1956_v56  ;;  %v1952_v56 = vcombine.low %v1121_v49, %v1125_v51 }
 0x1ff   :  { %1559 = vmatprep.subr.bf16.mxu1 %v1965_v57  ;;  %v1961_v57 = vcombine.high %v1129_v54, %v1133_v55 }
 0x202   :  { %1560 = vmatpush1.bf16.msra.mxu1 %v1964_v60  ;;  %v1960_v60 = vcombine.low %v1129_v54, %v1133_v55 }
 0x203   :  { %1586 = vmatprep.subr.bf16.mxu1 %v1911_v61  ;;  %v1969_v61 = vcombine.high %v1137_v58, %v1141_v59 }
 0x205   :  { %1578 = vmatmul.mubr.bf16.vlgmr.msra.gmra.mrb[8].mxu1 %v2452_v29 }
 0x206   :  { %1587 = vmatpush1.bf16.msra.mxu1 %v1910_v0  ;;  %1618 = vmatprep.mubr.bf16.mxu1 %v2321_v50 }
 0x207   :  { %1588 = vmatprep.subr.bf16.mxu1 %v1919_v47 }
 0x20a   :  { %1589 = vmatpush1.bf16.msra.mxu1 %v1918_v18 }
 0x20b   :  { %1590 = vmatprep.subr.bf16.mxu1 %v1927_v3 }
 0x20e   :  { %1591 = vmatpush1.bf16.msra.mxu1 %v1926_v7 }
 0x20f   :  { %1592 = vmatprep.subr.bf16.mxu1 %v1935_v8 }
 0x212   :  { %1593 = vmatpush1.bf16.msra.mxu1 %v1934_v11 }
 0x213   :  { %1594 = vmatprep.subr.bf16.mxu1 %v1943_v12 }
 0x216   :  { %1595 = vmatpush1.bf16.msra.mxu1 %v1942_v16 }
 0x217   :  { %1596 = vmatprep.subr.bf16.mxu1 %v1951_v17 }
 0x21a   :  { %1597 = vmatpush1.bf16.msra.mxu1 %v1950_v21 }
 0x21b   :  { %1598 = vmatprep.subr.bf16.mxu1 %v1959_v22 }
 0x21e   :  { %1599 = vmatpush1.bf16.msra.mxu1 %v1958_v25 }
 0x21f   :  { %1600 = vmatprep.subr.bf16.mxu1 %v1967_v26 }
 0x222   :  { %1601 = vmatpush1.bf16.msra.mxu1 %v1966_v30 }
 0x223   :  { %1627 = vmatprep.subr.bf16.mxu1 %v1913_v31 }
 0x225   :  { %1619 = vmatmul.mubr.bf16.vlgmr.msra.gmra.mrb[12].mxu1 %v2452_v29 }
 0x226   :  { %1628 = vmatpush1.bf16.msra.mxu1 %v1912_v34  ;;  %1659 = vmatprep.mubr.bf16.mxu1 %v2321_v50  ;;  %v1953_v50 = vcombine.high %v1121_v49, %v1125_v51 }
 0x227   :  { %1629 = vmatprep.subr.bf16.mxu1 %v1921_v35 }
 0x22a   :  { %1630 = vmatpush1.bf16.msra.mxu1 %v1920_v38 }
 0x22b   :  { %1631 = vmatprep.subr.bf16.mxu1 %v1929_v39 }
 0x22e   :  { %1632 = vmatpush1.bf16.msra.mxu1 %v1928_v42 }
 0x22f   :  { %1633 = vmatprep.subr.bf16.mxu1 %v1937_v43 }
 0x232   :  { %1634 = vmatpush1.bf16.msra.mxu1 %v1936_v46 }
 0x233   :  { %1635 = vmatprep.subr.bf16.mxu1 %v1945_v48 }
 0x236   :  { %1636 = vmatpush1.bf16.msra.mxu1 %v1944_v53 }
 0x237   :  { %1637 = vmatprep.subr.bf16.mxu1 %v1953_v50 }
 0x23a   :  { %1638 = vmatpush1.bf16.msra.mxu1 %v1952_v56 }
 0x23b   :  { %1639 = vmatprep.subr.bf16.mxu1 %v1961_v57 }
 0x23e   :  { %1640 = vmatpush1.bf16.msra.mxu1 %v1960_v60 }
 0x23f   :  { %1641 = vmatprep.subr.bf16.mxu1 %v1969_v61 }
 0x242   :  { %1642 = vmatpush1.bf16.msra.mxu1 %v1968_v62 }
 0x245   :  { %1660 = vmatmul.mubr.bf16.vlgmr.msra.gmra.mrb[16].mxu1 %v2452_v29 }
 0x246   :  { %2272 = shalt.err (!%p2269_p0)
}
 0x247   :  { %s2273_s22 = scalar_lea.hbm %s2506_s7, 64 }
 0x248   :  { %p2274_p1 = scmp.ne.s32.totalorder %s2506_s7, %s2273_s22  ;;  %p2277_p2 = scmp.lt.u32.totalorder %s2273_s22, %s2506_s7 }
 0x24a   :  { %p2279_p3 = pnand %p2277_p2, %p2274_p1 }
 0x24c   :  { %2282 = shalt.err (!%p2279_p3)
}
 0x24d   :  { %1766 = dma.vmem_to_hbm [thread:$0]  %s1764_s18, 64, %s2506_s7, [#allocation10]   ;;  %v1142_v29 = vld [vmem:[%s2503_s4] sm:$0xff]  ;;  %v1154_v7 = vsub.s32 2, %v2401_v15  ;;  %v2323_v8 = vmov 1966171168  }
 0x24e   :  { %v1147_v63 = vrot.slane %v1142_v29, %v253_v6  ;;  %v1151_v0 = vrot.slane %v1142_v29, %v257_v52  ;;  %v1689_v9 = vunpack.c.l.s4 %v2323_v8  ;;  %v1158_v10 = vsub.s32 3, %v2401_v15  ;;  %s2324_s4 = smov [#allocation8]  }
 0x24f   :  { %v1155_v11 = vrot.slane %v1142_v29, %v1154_v7  ;;  %v1162_v25 = vsub.s32 4, %v2401_v15  ;;  %v1166_v26 = vsub.s32 5, %v2401_v15  ;;  %v1170_v37 = vsub.s32 6, %v2401_v15  ;;  %s1753_s7 = sshll.u32 %s2324_s4, 4  ;;  %s1754_s7 = int_to_ptr.vmem [resolvable:$true] %s1753_s7 }
 0x250   :  { %v1690_v12 = vunpack.c.0.s8 %v1689_v9  ;;  %v1159_v13 = vrot.slane %v1142_v29, %v1158_v10  ;;  %v1174_v38 = vsub.s32 7, %v2401_v15  ;;  %s2283_s30 = scalar_lea.vmem %s1754_s7, 128  ;;  %p2288_p5 = scmp.lt.s32.totalorder %s1754_s7, %s1754_s7 }
 0x251   :  { %v1163_v27 = vrot.slane %v1142_v29, %v1162_v25  ;;  %v1167_v28 = vrot.slane %v1142_v29, %v1166_v26  ;;  %v1171_v39 = vrot.slane %v1142_v29, %v1170_v37  ;;  %p2284_p4 = scmp.ne.s32.totalorder %s1754_s7, %s2283_s30  ;;  %p2289_p6 = scmp.lt.s32.totalorder %s2283_s30, %s2283_s30 }
 0x252   :  { %v1693_v52 = vsub.s32 %v1690_v12, %v2401_v15  ;;  %v1175_v40 = vrot.slane %v1142_v29, %v1174_v38 }
 0x253   :  { %p2290_p7 = por %p2289_p6, %p2288_p5 }
 0x255   :  { %p2291_p8 = pnand %p2290_p7, %p2284_p4 }
 0x2b8   :  { %v1538_v47 = vpop.f32.mrb[4].mxu1 }
 0x2b9   :  { %v1539_v1 = vadd.f32 %v1538_v47, %v1147_v63  ;;  %v1540_v2 = vpop.f32.mrb[5].mxu1 }
 0x2ba   :  { %v1541_v18 = vadd.f32 %v1540_v2, %v1151_v0  ;;  %v1542_v3 = vpop.f32.mrb[6].mxu1 }
 0x2bb   :  { %v1543_v4 = vpop.f32.mrb[7].mxu1 }
 0x2bc   :  { %v1970_v5 = vpack.c.bf16 %v1541_v18, %v1539_v1 }
 0x2be   :  { %v1694_v22 = vrot.slane %v1970_v5, %v1693_v52 }
 0x2d8   :  { %v1579_v6 = vpop.f32.mrb[8].mxu1 }
 0x2d9   :  { %v1580_v14 = vadd.f32 %v1579_v6, %v1155_v11  ;;  %v1581_v16 = vpop.f32.mrb[9].mxu1 }
 0x2da   :  { %v1582_v17 = vadd.f32 %v1581_v16, %v1159_v13  ;;  %v1583_v19 = vpop.f32.mrb[10].mxu1 }
 0x2db   :  { %v1584_v20 = vpop.f32.mrb[11].mxu1 }
 0x2dc   :  { %v1971_v21 = vpack.c.bf16 %v1582_v17, %v1580_v14 }
 0x2de   :  { %v1701_v23 = vrot.slane %v1971_v21, %v1693_v52 }
 0x2e0   :  { %v1716_v24 = vcombine.low %v1694_v22, %v1701_v23 }
 0x2e2   :  { %v1724_v50 = vrot.slane %v1716_v24, %v1693_v52 }
 0x2f8   :  { %v1620_v30 = vpop.f32.mrb[12].mxu1 }
 0x2f9   :  { %v1621_v31 = vadd.f32 %v1620_v30, %v1163_v27  ;;  %v1622_v32 = vpop.f32.mrb[13].mxu1 }
 0x2fa   :  { %v1623_v33 = vadd.f32 %v1622_v32, %v1167_v28  ;;  %v1624_v34 = vpop.f32.mrb[14].mxu1 }
 0x2fb   :  { %v1625_v35 = vpop.f32.mrb[15].mxu1 }
 0x2fc   :  { %v1972_v36 = vpack.c.bf16 %v1623_v33, %v1621_v31 }
 0x2fe   :  { %v1708_v49 = vrot.slane %v1972_v36, %v1693_v52 }
 0x318   :  { %v1661_v41 = vpop.f32.mrb[16].mxu1 }
 0x319   :  { %v1662_v42 = vadd.f32 %v1661_v41, %v1171_v39  ;;  %v1663_v43 = vpop.f32.mrb[17].mxu1 }
 0x31a   :  { %v1664_v44 = vadd.f32 %v1663_v43, %v1175_v40  ;;  %v1665_v45 = vpop.f32.mrb[18].mxu1 }
 0x31b   :  { %v1666_v46 = vpop.f32.mrb[19].mxu1 }
 0x31c   :  { %v1973_v48 = vpack.c.bf16 %v1664_v44, %v1662_v42 }
 0x31e   :  { %v1715_v51 = vrot.slane %v1973_v48, %v1693_v52 }
 0x320   :  { %v1717_v53 = vcombine.low %v1708_v49, %v1715_v51 }
 0x322   :  { %v1731_v54 = vrot.slane %v1717_v53, %v1693_v52 }
 0x324   :  { %v1732_v55 = vcombine.low %v1724_v50, %v1731_v54 }
 0x326   :  { %1734 = vst [vmem:[#allocation8] sm:$0xff] %v1732_v55 }
 0x327   :  { %2294 = shalt.err (!%p2291_p8)
}
 0x328   :  { %s2295_s10 = scalar_lea.hbm %s2505_s6, 128 }
 0x329   :  { %p2296_p9 = scmp.ne.s32.totalorder %s2505_s6, %s2295_s10  ;;  %p2299_p10 = scmp.lt.u32.totalorder %s2295_s10, %s2505_s6 }
 0x32b   :  { %p2301_p11 = pnand %p2299_p10, %p2296_p9 }
 0x32d   :  { %2304 = shalt.err (!%p2301_p11)
}
 0x32e   :  { %1756 = dma.vmem_to_hbm [thread:$0]  %s1754_s7, 128, %s2505_s6, [#allocation4]  }
 0x32f   :  { %2309 = dma.done.wait [#allocation4], 128  }
 0x330   :  { %2310 = vsyncadd [#allocation4], 4294967168 }
 0x331   :  { %2311 = dma.done.wait [#allocation10], 64  }
 0x332   :  { %2312 = vsyncadd [#allocation10], 4294967232 }
 0x333   :  { %1773 = vsyncpa [#allocation3], 1 }
 0x334   :  { %1774 = vsyncpa [#allocation6], 1 }
 0x335   :  { %1775 = vsyncpa [#allocation4], 1 }
 0x336   :  { %1776 = vsyncpa [#allocation10], 1 }

</bundles_post_ra>
